<compile_context>
chip_gen: v7x
topology: tpu7x:2x2x1
jax: 0.10.0
libtpu: 0.0.40
codegen_flags: <defaults>
</compile_context>

<pallas_src>
import functools

import jax
import jax.numpy as jnp
from jax.experimental import pallas as pl
from jax.experimental.pallas import tpu as pltpu

NEG_SLOPE = 0.01   # torch.nn.functional.leaky_relu default negative_slope
LANE = 128         # TPU lane width


def _round_up(n, m):
    return ((n + m - 1) // m) * m


def _cdiv(a, b):
    return (a + b - 1) // b


def _next_pow2(n):
    p = 1
    while p < n:
        p *= 2
    return p


def _leaky_relu(x):
    return jnp.where(x > 0, x, NEG_SLOPE * x)


def mlp_kernel(x_ref, w1_ref, w2_ref, w3_ref, b1_ref, b2_ref, b3_ref, o_ref):
    """Fused 3-layer MLP on one [TB, F] batch tile.

    x_ref  : [TB, F]   f32 (narrow, unpadded input features)
    w1_ref : [F,  P]   weight_dtype (hidden dim zero-padded to P = 128k lanes)
    w2_ref : [P,  P]   weight_dtype
    w3_ref : [P,  O]   weight_dtype (narrow, unpadded output features)
    b1_ref : [1,  P]   f32
    b2_ref : [1,  P]   f32
    b3_ref : [1,  O]   f32
    o_ref  : [TB, O]   f32 (narrow output written straight to HBM)
    """
    cdt = w1_ref.dtype  # matmul-operand dtype (bf16 default, f32 optional)

    # Layer 1: [TB, F] @ [F, P]  (tiny K; MXU pads/masks internally)
    h = jnp.dot(x_ref[...].astype(cdt), w1_ref[...],
                preferred_element_type=jnp.float32)
    h = _leaky_relu(h + b1_ref[...])          # bias/activation in f32 (v5e VPU)

    # Layer 2: [TB, P] @ [P, P]
    h = jnp.dot(h.astype(cdt), w2_ref[...], preferred_element_type=jnp.float32)
    h = _leaky_relu(h + b2_ref[...])

    # Layer 3: [TB, P] @ [P, O], narrow store
    out = jnp.dot(h.astype(cdt), w3_ref[...], preferred_element_type=jnp.float32)
    o_ref[...] = (out + b3_ref[...]).astype(o_ref.dtype)


def pack_params(params, *, weight_dtype=jnp.bfloat16):
    """Pad hidden dim to the lane width and cast weights (do ONCE per model).

    weight_dtype=jnp.bfloat16 (default) is the fast path on v6e/v7x;
    pass jnp.float32 for a bit-accurate-to-f32 path.
    """
    w1, b1, w2, b2, w3, b3 = (params["w1"], params["b1"], params["w2"],
                              params["b2"], params["w3"], params["b3"])
    in_size, hid = w1.shape
    out_size = w3.shape[1]
    P = _round_up(hid, LANE)

    w1p = jnp.zeros((in_size, P), weight_dtype).at[:, :hid].set(w1.astype(weight_dtype))
    w2p = jnp.zeros((P, P), weight_dtype).at[:hid, :hid].set(w2.astype(weight_dtype))
    w3p = jnp.zeros((P, out_size), weight_dtype).at[:hid, :].set(w3.astype(weight_dtype))

    b1p = jnp.zeros((1, P), jnp.float32).at[0, :hid].set(b1.reshape(-1))
    b2p = jnp.zeros((1, P), jnp.float32).at[0, :hid].set(b2.reshape(-1))
    b3p = b3.reshape(1, out_size).astype(jnp.float32)

    return {"w1": w1p, "w2": w2p, "w3": w3p, "b1": b1p, "b2": b2p, "b3": b3p,
            "input_size": in_size, "hidden_size": hid, "output_size": out_size}


def _choose_tiling(B, batch_tile):
    """Pick (tile_rows, padded_batch).

    - tiny / small batches: single tile, bucketed to a power of two
      (bounds the number of distinct compiled shapes for RL rollouts);
    - mid / large batches: >= 2 grid steps (keeps both v7x TCs busy), tile
      rounded to 128 rows so dead-row waste and recompiles are both bounded.
    """
    if B <= 8:
        return 8, 8
    if B <= 512:
        bp = _next_pow2(_round_up(B, 8))
        return bp, bp
    n_tiles = max(2, _cdiv(B, batch_tile))
    tb = _round_up(_cdiv(B, n_tiles), 128)
    return tb, tb * n_tiles


@functools.partial(jax.jit, static_argnames=("batch_tile",))
def _forward_jit(x, w1, w2, w3, b1, b2, b3, *, batch_tile):
    """Single jitted dispatch: batch pad -> pallas_call -> batch slice."""
    B, F = x.shape
    out_size = w3.shape[1]
    tb, Bp = _choose_tiling(B, batch_tile)

    x_in = x if Bp == B else jnp.zeros((Bp, F), x.dtype).at[:B, :].set(x)

    vmem_resident = pl.BlockSpec(memory_space=pltpu.MemorySpace.VMEM)
    out = pl.pallas_call(
        mlp_kernel,
        out_shape=jax.ShapeDtypeStruct((Bp, out_size), jnp.float32),
        grid=(Bp // tb,),
        in_specs=[
            # Only the batch axis of x is blocked/pipelined; the feature dim
            # stays at its narrow full extent (legal: equals the array dim).
            pl.BlockSpec((tb, F), lambda i: (i, 0)),
            # Params: whole (tiny) arrays resident in VMEM for every tile.
            vmem_resident, vmem_resident, vmem_resident,
            vmem_resident, vmem_resident, vmem_resident,
        ],
        out_specs=pl.BlockSpec((tb, out_size), lambda i: (i, 0)),
        compiler_params=pltpu.CompilerParams(
            dimension_semantics=("parallel",),     # megacore / 2-TC sharding
            vmem_limit_bytes=16 * 1024 * 1024,     # fits v5e/v6e/v7x budgets
        ),
    )(x_in, w1, w2, w3, b1, b2, b3)

    return out if Bp == B else out[:B]


def neural_net_forward(x, packed, *, batch_tile=2048):
    """x: [B, input_size] float32.  packed: output of pack_params()."""
    return _forward_jit(x.astype(jnp.float32),
                        packed["w1"], packed["w2"], packed["w3"],
                        packed["b1"], packed["b2"], packed["b3"],
                        batch_tile=batch_tile)


def init_params(key, input_size, hidden_size, output_size):
    """Deterministic init mimicking torch.nn.Linear's U(-1/sqrt(in), 1/sqrt(in))."""
    def make_layer(k, fan_in, fan_out):
        kw, kb = jax.random.split(k)
        bound = 1.0 / jnp.sqrt(fan_in)
        w = jax.random.uniform(kw, (fan_in, fan_out), jnp.float32, -bound, bound)
        b = jax.random.uniform(kb, (1, fan_out), jnp.float32, -bound, bound)
        return w, b

    k1, k2, k3 = jax.random.split(key, 3)
    w1, b1 = make_layer(k1, input_size, hidden_size)
    w2, b2 = make_layer(k2, hidden_size, hidden_size)
    w3, b3 = make_layer(k3, hidden_size, output_size)
    return {"w1": w1, "b1": b1, "w2": w2, "b2": b2, "w3": w3, "b3": b3}


def reference_forward(x, p):
    hp = jax.lax.Precision.HIGHEST
    h = _leaky_relu(jnp.dot(x, p["w1"], precision=hp) + p["b1"])
    h = _leaky_relu(jnp.dot(h, p["w2"], precision=hp) + p["b2"])
    return jnp.dot(h, p["w3"], precision=hp) + p["b3"]


# TODO(synk): NeuralNet.save/load (torch.save / torch.load of the state_dict)
# are host-side checkpoint I/O with no Pallas equivalent; not implemented.

if __name__ == "__main__":
    key = jax.random.PRNGKey(0)
    # Flappy-bird-ish sizes: small feature vector, small hidden, 2 actions.
    batch, input_size, hidden_size, output_size = 8, 4, 32, 2

    kp, kx = jax.random.split(key)
    params = init_params(kp, input_size, hidden_size, output_size)
    x = jax.random.normal(kx, (batch, input_size), jnp.float32)
    ref = reference_forward(x, params)

    # f32-weight path.  Tolerance allows for MXU matmul-precision differences
    # between the Mosaic kernel and the XLA reference.
    packed_f32 = pack_params(params, weight_dtype=jnp.float32)
    out = jax.block_until_ready(neural_net_forward(x, packed_f32))
    assert out.shape == (batch, output_size)
    assert jnp.allclose(out, ref, atol=2e-2, rtol=2e-2)

    # bf16-weight path (default; fast path on v6e/v7x) — looser tolerance.
    packed_bf16 = pack_params(params)
    out_bf = jax.block_until_ready(neural_net_forward(x, packed_bf16))
    assert out_bf.shape == (batch, output_size)
    assert jnp.allclose(out_bf, ref, atol=7.5e-2, rtol=7.5e-2)

    # Ragged large batch exercises the multi-tile (grid) path:
    # B=1040 -> 2 tiles of 640 rows, padded batch 1280.
    kx2 = jax.random.fold_in(kx, 1)
    x_big = jax.random.normal(kx2, (1040, input_size), jnp.float32)
    out_big = jax.block_until_ready(neural_net_forward(x_big, packed_f32))
    ref_big = reference_forward(x_big, params)
    assert out_big.shape == (1040, output_size)
    assert jnp.allclose(out_big, ref_big, atol=2e-2, rtol=2e-2)

    print("KERNEL_OK")
</pallas_src>

<mosaic_0001>
module attributes {stable_mosaic.version = 11 : i64} {
  func.func @mlp_kernel(%arg0: i32, %arg1: memref<8x4xf32, #tpu.memory_space<vmem>>, %arg2: memref<4x128xf32, #tpu.memory_space<vmem>>, %arg3: memref<128x128xf32, #tpu.memory_space<vmem>>, %arg4: memref<128x2xf32, #tpu.memory_space<vmem>>, %arg5: memref<1x128xf32, #tpu.memory_space<vmem>>, %arg6: memref<1x128xf32, #tpu.memory_space<vmem>>, %arg7: memref<1x2xf32, #tpu.memory_space<vmem>>, %arg8: memref<8x2xf32, #tpu.memory_space<vmem>>) attributes {dimension_semantics = [#tpu.dimension_semantics<parallel>], iteration_bounds = array<i64: 1>, scalar_prefetch = 0 : i64, scratch_operands = 0 : i64, tpu.core_type = #tpu.core_type<tc>, window_params = [{transform_indices = @transform_0, window_bounds = array<i64: 8, 4>}, {pipeline_mode = #tpu.pipeline_mode<synchronous>, transform_indices = @transform_1, window_bounds = array<i64: 4, 128>}, {pipeline_mode = #tpu.pipeline_mode<synchronous>, transform_indices = @transform_2, window_bounds = array<i64: 128, 128>}, {pipeline_mode = #tpu.pipeline_mode<synchronous>, transform_indices = @transform_3, window_bounds = array<i64: 128, 2>}, {pipeline_mode = #tpu.pipeline_mode<synchronous>, transform_indices = @transform_4, window_bounds = array<i64: 1, 128>}, {pipeline_mode = #tpu.pipeline_mode<synchronous>, transform_indices = @transform_5, window_bounds = array<i64: 1, 128>}, {pipeline_mode = #tpu.pipeline_mode<synchronous>, transform_indices = @transform_6, window_bounds = array<i64: 1, 2>}, {transform_indices = @transform_7, window_bounds = array<i64: 8, 2>}]} {
    %c0 = arith.constant 0 : index
    %c0_0 = arith.constant 0 : index
    %0 = vector.load %arg1[%c0, %c0_0] : memref<8x4xf32, #tpu.memory_space<vmem>>, vector<8x4xf32>
    %c0_1 = arith.constant 0 : index
    %c0_2 = arith.constant 0 : index
    %1 = vector.load %arg2[%c0_1, %c0_2] : memref<4x128xf32, #tpu.memory_space<vmem>>, vector<4x128xf32>
    %cst = arith.constant dense<0.000000e+00> : vector<8x128xf32>
    %2 = tpu.matmul %0, %1, %cst {dimension_numbers = #tpu.dot_dimension_numbers<[1], [0], [0], [1], [0, 0, 1, 1], [], []>} : vector<8x4xf32>, vector<4x128xf32>, vector<8x128xf32> -> vector<8x128xf32>
    %c0_3 = arith.constant 0 : index
    %c0_4 = arith.constant 0 : index
    %3 = vector.load %arg5[%c0_3, %c0_4] : memref<1x128xf32, #tpu.memory_space<vmem>>, vector<1x128xf32>
    %4 = vector.broadcast %3 : vector<1x128xf32> to vector<8x128xf32>
    %5 = arith.addf %2, %4 : vector<8x128xf32>
    %cst_5 = arith.constant 0.000000e+00 : f32
    %6 = vector.broadcast %cst_5 : f32 to vector<8x128xf32>
    %7 = arith.cmpf ogt, %5, %6 : vector<8x128xf32>
    %cst_6 = arith.constant 0.00999999977 : f32
    %8 = vector.broadcast %cst_6 : f32 to vector<8x128xf32>
    %9 = arith.mulf %8, %5 : vector<8x128xf32>
    %10 = arith.select %7, %5, %9 : vector<8x128xi1>, vector<8x128xf32>
    %c0_7 = arith.constant 0 : index
    %c0_8 = arith.constant 0 : index
    %11 = vector.load %arg3[%c0_7, %c0_8] : memref<128x128xf32, #tpu.memory_space<vmem>>, vector<128x128xf32>
    %cst_9 = arith.constant dense<0.000000e+00> : vector<8x128xf32>
    %12 = tpu.matmul %10, %11, %cst_9 {dimension_numbers = #tpu.dot_dimension_numbers<[1], [0], [0], [1], [0, 0, 1, 1], [], []>} : vector<8x128xf32>, vector<128x128xf32>, vector<8x128xf32> -> vector<8x128xf32>
    %c0_10 = arith.constant 0 : index
    %c0_11 = arith.constant 0 : index
    %13 = vector.load %arg6[%c0_10, %c0_11] : memref<1x128xf32, #tpu.memory_space<vmem>>, vector<1x128xf32>
    %14 = vector.broadcast %13 : vector<1x128xf32> to vector<8x128xf32>
    %15 = arith.addf %12, %14 : vector<8x128xf32>
    %cst_12 = arith.constant 0.000000e+00 : f32
    %16 = vector.broadcast %cst_12 : f32 to vector<8x128xf32>
    %17 = arith.cmpf ogt, %15, %16 : vector<8x128xf32>
    %cst_13 = arith.constant 0.00999999977 : f32
    %18 = vector.broadcast %cst_13 : f32 to vector<8x128xf32>
    %19 = arith.mulf %18, %15 : vector<8x128xf32>
    %20 = arith.select %17, %15, %19 : vector<8x128xi1>, vector<8x128xf32>
    %c0_14 = arith.constant 0 : index
    %c0_15 = arith.constant 0 : index
    %21 = vector.load %arg4[%c0_14, %c0_15] : memref<128x2xf32, #tpu.memory_space<vmem>>, vector<128x2xf32>
    %cst_16 = arith.constant dense<0.000000e+00> : vector<8x2xf32>
    %22 = tpu.matmul %20, %21, %cst_16 {dimension_numbers = #tpu.dot_dimension_numbers<[1], [0], [0], [1], [0, 0, 1, 1], [], []>} : vector<8x128xf32>, vector<128x2xf32>, vector<8x2xf32> -> vector<8x2xf32>
    %c0_17 = arith.constant 0 : index
    %c0_18 = arith.constant 0 : index
    %23 = vector.load %arg7[%c0_17, %c0_18] : memref<1x2xf32, #tpu.memory_space<vmem>>, vector<1x2xf32>
    %24 = vector.broadcast %23 : vector<1x2xf32> to vector<8x2xf32>
    %25 = arith.addf %22, %24 : vector<8x2xf32>
    %c0_19 = arith.constant 0 : index
    %c0_20 = arith.constant 0 : index
    %26 = vector.load %arg8[%c0_19, %c0_20] : memref<8x2xf32, #tpu.memory_space<vmem>>, vector<8x2xf32>
    tpu.vector_store %arg8[%c0_19, %c0_20], %25 {strides = array<i32>} : memref<8x2xf32, #tpu.memory_space<vmem>>, vector<8x2xf32>,
    return
  }
  func.func @transform_0(%arg0: i32) -> (i32, i32) {
    %c0_i32 = arith.constant 0 : i32
    %c0_i32_0 = arith.constant 0 : i32
    return %arg0, %c0_i32 : i32, i32
  }
  func.func @transform_1(%arg0: i32) -> (i32, i32) {
    %c0_i32 = arith.constant 0 : i32
    %c0_i32_0 = arith.constant 0 : i32
    %c0_i32_1 = arith.constant 0 : i32
    return %c0_i32, %c0_i32_0 : i32, i32
  }
  func.func @transform_2(%arg0: i32) -> (i32, i32) {
    %c0_i32 = arith.constant 0 : i32
    %c0_i32_0 = arith.constant 0 : i32
    %c0_i32_1 = arith.constant 0 : i32
    return %c0_i32, %c0_i32_0 : i32, i32
  }
  func.func @transform_3(%arg0: i32) -> (i32, i32) {
    %c0_i32 = arith.constant 0 : i32
    %c0_i32_0 = arith.constant 0 : i32
    %c0_i32_1 = arith.constant 0 : i32
    return %c0_i32, %c0_i32_0 : i32, i32
  }
  func.func @transform_4(%arg0: i32) -> (i32, i32) {
    %c0_i32 = arith.constant 0 : i32
    %c0_i32_0 = arith.constant 0 : i32
    %c0_i32_1 = arith.constant 0 : i32
    return %c0_i32, %c0_i32_0 : i32, i32
  }
  func.func @transform_5(%arg0: i32) -> (i32, i32) {
    %c0_i32 = arith.constant 0 : i32
    %c0_i32_0 = arith.constant 0 : i32
    %c0_i32_1 = arith.constant 0 : i32
    return %c0_i32, %c0_i32_0 : i32, i32
  }
  func.func @transform_6(%arg0: i32) -> (i32, i32) {
    %c0_i32 = arith.constant 0 : i32
    %c0_i32_0 = arith.constant 0 : i32
    %c0_i32_1 = arith.constant 0 : i32
    return %c0_i32, %c0_i32_0 : i32, i32
  }
  func.func @transform_7(%arg0: i32) -> (i32, i32) {
    %c0_i32 = arith.constant 0 : i32
    %c0_i32_0 = arith.constant 0 : i32
    return %arg0, %c0_i32 : i32, i32
  }
}

</mosaic_0001>

<bundles_post_ra>
// kernel: _forward_jit.1
= control target key start
LH: loop header
LB: loop body
LE: loop exit
PB: predicated region body
PF: predicated region fallthrough
CT: control target
= control target key end

     0   :  { %vm39_vm0 = vcmask 1043456   ;;  %vm35_vm1 = vcmask 31744   ;;  %v478_v0 = vmov 0.0   ;;  %vm479_vm2 = vmmov 0   ;;  %s651_s1 = inlined_call_operand.vmem [shape: f32[4,128], index: 1, kind: input, shape index: {}]   ;;  %s652_s0 = inlined_call_operand.vmem [shape: f32[8,4], index: 0, kind: input, shape index: {}]   ;;  %s653_s2 = inlined_call_operand.vmem [shape: f32[128,128], index: 2, kind: input, shape index: {}]   ;;  %s654_s3 = inlined_call_operand.vmem [shape: f32[128,2], index: 3, kind: input, shape index: {}]   ;;  %s655_s4 = inlined_call_operand.vmem [shape: f32[1,128], index: 4, kind: input, shape index: {}]   ;;  %s656_s5 = inlined_call_operand.vmem [shape: f32[1,128], index: 5, kind: input, shape index: {}]   ;;  %s657_s6 = inlined_call_operand.vmem [shape: f32[1,2], index: 6, kind: input, shape index: {}]   ;;  %s658_s7 = inlined_call_operand.vmem [shape: f32[8,2], index: 7, kind: output, shape index: {}]  }
   0x1   :  { %352 = vmatprep.subr.mxu0 %v478_v0  ;;  %v27_v1 = vld [vmem:[%s651_s1] sm:$0xf]  ;;  %354 = vmatprep.mubr.msk.f32.mxu0 %vm479_vm2, %v478_v0  ;;  %v480_v4 = vmov 0.0|0.0   ;;  %v117_v5 = vld [vmem:[%s653_s2 + $0x8] sm:$0xff]  ;;  %v118_v6 = vld [vmem:[%s653_s2 + $0x10] sm:$0xff]  ;;  %vm305_vm5 = vcmask 15360  }
   0x2   :  { %v26_v2 = vld [vmem:[%s652_s0] sm:$0xff]  ;;  %353 = vmatpush3.msk.msra.mxu0 %vm39_vm0, %v27_v1  ;;  %427 = vmatprep.subr.bf16.mxu1 %v480_v4  ;;  %v119_v7 = vld [vmem:[%s653_s2 + $0x18] sm:$0xff]  ;;  %v121_v11 = vld [vmem:[%s653_s2 + $0x28] sm:$0xff] }
   0x3   :  { %v116_v3 = vld [vmem:[%s653_s2] sm:$0xff]  ;;  %355 = vmatmul.mubr.msk.f32.vlgmr.msra.gmra.mrb[0].mxu0 %vm35_vm1, %v26_v2  ;;  %389 = vmatprep.mubr.msk.f32.mxu1 %vm479_vm2, %v478_v0  ;;  %v431_v9 = vpack.c.bf16 %v119_v7, %v118_v6  ;;  %v122_v13 = vld [vmem:[%s653_s2 + $0x30] sm:$0xff]  ;;  %v123_v14 = vld [vmem:[%s653_s2 + $0x38] sm:$0xff] }
   0x4   :  { %v428_v8 = vpack.c.bf16 %v117_v5, %v116_v3  ;;  %451 = vmatprep.subr.bf16.mxu0 %v480_v4  ;;  %424 = vmatprep.mubr.msk.f32.mxu0 %vm479_vm2, %v478_v0  ;;  %v120_v10 = vld [vmem:[%s653_s2 + $0x20] sm:$0xff]  ;;  %v437_v15 = vpack.c.bf16 %v123_v14, %v122_v13  ;;  %v125_v17 = vld [vmem:[%s653_s2 + $0x48] sm:$0xff]  ;;  %v126_v19 = vld [vmem:[%s653_s2 + $0x50] sm:$0xff] }
   0x5   :  { %v434_v12 = vpack.c.bf16 %v121_v11, %v120_v10  ;;  %v124_v16 = vld [vmem:[%s653_s2 + $0x40] sm:$0xff]  ;;  %v127_v20 = vld [vmem:[%s653_s2 + $0x58] sm:$0xff]  ;;  %v129_v23 = vld [vmem:[%s653_s2 + $0x68] sm:$0xff] }
   0x6   :  { %429 = vmatpush3.bf16.msra.mxu1 %v428_v8  ;;  %v440_v18 = vpack.c.bf16 %v125_v17, %v124_v16  ;;  %v443_v21 = vpack.c.bf16 %v127_v20, %v126_v19  ;;  %v128_v22 = vld [vmem:[%s653_s2 + $0x60] sm:$0xff]  ;;  %v130_v25 = vld [vmem:[%s653_s2 + $0x70] sm:$0xff]  ;;  %v131_v26 = vld [vmem:[%s653_s2 + $0x78] sm:$0xff] }
   0x7   :  { %430 = vmatprep.subr.bf16.mxu1 %v480_v4  ;;  %v446_v24 = vpack.c.bf16 %v129_v23, %v128_v22  ;;  %v449_v27 = vpack.c.bf16 %v131_v26, %v130_v25  ;;  %v212_v28 = vld [vmem:[%s654_s3] sm:$0xff]  ;;  %v213_v29 = vld [vmem:[%s654_s3 + $0x8] sm:$0xff]  ;;  %v214_v30 = vld [vmem:[%s654_s3 + $0x10] sm:$0xff] }
   0x8   :  { %v452_v31 = vpack.c.bf16 %v213_v29, %v212_v28  ;;  %v215_v32 = vld [vmem:[%s654_s3 + $0x18] sm:$0xff]  ;;  %v216_v34 = vld [vmem:[%s654_s3 + $0x20] sm:$0xff]  ;;  %v217_v35 = vld [vmem:[%s654_s3 + $0x28] sm:$0xff] }
   0x9   :  { %v455_v33 = vpack.c.bf16 %v215_v32, %v214_v30  ;;  %v458_v36 = vpack.c.bf16 %v217_v35, %v216_v34  ;;  %v218_v37 = vld [vmem:[%s654_s3 + $0x30] sm:$0xff]  ;;  %v219_v38 = vld [vmem:[%s654_s3 + $0x38] sm:$0xff]  ;;  %v220_v40 = vld [vmem:[%s654_s3 + $0x40] sm:$0xff] }
   0xa   :  { %432 = vmatpush3.bf16.msra.mxu1 %v431_v9  ;;  %453 = vmatpush3.bf16.msra.mxu0 %v452_v31  ;;  %v461_v39 = vpack.c.bf16 %v219_v38, %v218_v37  ;;  %v221_v41 = vld [vmem:[%s654_s3 + $0x48] sm:$0xff]  ;;  %v222_v43 = vld [vmem:[%s654_s3 + $0x50] sm:$0xff]  ;;  %v223_v44 = vld [vmem:[%s654_s3 + $0x58] sm:$0xff] }
   0xb   :  { %433 = vmatprep.subr.bf16.mxu1 %v480_v4  ;;  %454 = vmatprep.subr.bf16.mxu0 %v480_v4  ;;  %v464_v42 = vpack.c.bf16 %v221_v41, %v220_v40  ;;  %v467_v45 = vpack.c.bf16 %v223_v44, %v222_v43  ;;  %v224_v46 = vld [vmem:[%s654_s3 + $0x60] sm:$0xff]  ;;  %v225_v47 = vld [vmem:[%s654_s3 + $0x68] sm:$0xff]  ;;  %v226_v55 = vld [vmem:[%s654_s3 + $0x70] sm:$0xff] }
   0xc   :  { %v470_v48 = vpack.c.bf16 %v225_v47, %v224_v46  ;;  %v311_v49 = vld [vmem:[%s655_s4] ss:$0 sm:$0xff]  ;;  %v227_v56 = vld [vmem:[%s654_s3 + $0x78] sm:$0xff] }
   0xd   :  { %v473_v57 = vpack.c.bf16 %v227_v56, %v226_v55  ;;  %v314_v58 = vld [vmem:[%s656_s5] ss:$0 sm:$0xff] }
   0xe   :  { %435 = vmatpush3.bf16.msra.mxu1 %v434_v12  ;;  %456 = vmatpush3.bf16.msra.mxu0 %v455_v33  ;;  %v315_v0 = vld [vmem:[%s657_s6] ss:$0 sm:$0xff] }
   0xf   :  { %436 = vmatprep.subr.bf16.mxu1 %v480_v4  ;;  %457 = vmatprep.subr.bf16.mxu0 %v480_v4 }
  0x12   :  { %438 = vmatpush3.bf16.msra.mxu1 %v437_v15  ;;  %459 = vmatpush3.bf16.msra.mxu0 %v458_v36 }
  0x13   :  { %439 = vmatprep.subr.bf16.mxu1 %v480_v4  ;;  %460 = vmatprep.subr.bf16.mxu0 %v480_v4 }
  0x16   :  { %441 = vmatpush3.bf16.msra.mxu1 %v440_v18  ;;  %462 = vmatpush3.bf16.msra.mxu0 %v461_v39 }
  0x17   :  { %442 = vmatprep.subr.bf16.mxu1 %v480_v4  ;;  %463 = vmatprep.subr.bf16.mxu0 %v480_v4 }
  0x1a   :  { %444 = vmatpush3.bf16.msra.mxu1 %v443_v21  ;;  %465 = vmatpush3.bf16.msra.mxu0 %v464_v42 }
  0x1b   :  { %445 = vmatprep.subr.bf16.mxu1 %v480_v4  ;;  %466 = vmatprep.subr.bf16.mxu0 %v480_v4 }
  0x1e   :  { %447 = vmatpush3.bf16.msra.mxu1 %v446_v24  ;;  %468 = vmatpush3.bf16.msra.mxu0 %v467_v45 }
  0x1f   :  { %448 = vmatprep.subr.bf16.mxu1 %v480_v4  ;;  %469 = vmatprep.subr.bf16.mxu0 %v480_v4 }
  0x22   :  { %450 = vmatpush3.bf16.msra.mxu1 %v449_v27  ;;  %471 = vmatpush3.bf16.msra.mxu0 %v470_v48 }
  0x23   :  { %472 = vmatprep.subr.bf16.mxu0 %v480_v4 }
  0x26   :  { %474 = vmatpush3.bf16.msra.mxu0 %v473_v57 }
  0xd6   :  { %v109_v50 = vpop.f32.mrb[0].mxu0 }
  0xd7   :  { %v110_v51 = vadd.f32 %v311_v49, %v109_v50  ;;  %v356_v52 = vpop.f32.mrb[1].mxu0 }
  0xd9   :  { %v114_v53 = vmul.f32 0.01, %v110_v51  ;;  %vm113_vm3 = vcmp.gt.f32.partialorder %v110_v51, 0.0 }
  0xdb   :  { %v115_v54 = vsel %vm113_vm3, %v110_v51, %v114_v53 }
  0xdc   :  { %390 = vmatmul.mubr.f32.vlgmr.msra.gmra.mrb[0].mxu1 %v115_v54 }
 0x1af   :  { %v205_v59 = vpop.f32.mrb[0].mxu1 }
 0x1b0   :  { %v206_v60 = vadd.f32 %v314_v58, %v205_v59  ;;  %v391_v61 = vpop.f32.mrb[1].mxu1 }
 0x1b2   :  { %vm209_vm4 = vcmp.gt.f32.partialorder %v206_v60, 0.0  ;;  %v210_v62 = vmul.f32 0.01, %v206_v60 }
 0x1b4   :  { %v211_v63 = vsel %vm209_vm4, %v206_v60, %v210_v62 }
 0x1b5   :  { %425 = vmatmul.mubr.f32.vlgmr.msra.gmra.mrb[2].mxu0 %v211_v63 }
 0x288   :  { %v301_v1 = vpop.f32.mrb[2].mxu0 }
 0x289   :  { %v302_v2 = vadd.f32 %v315_v0, %v301_v1  ;;  %v426_v3 = vpop.f32.mrb[3].mxu0 }
 0x28b   :  { %306 = vst.msk [vmem:[%s658_s7] sm:$0xff] %vm305_vm5, %v302_v2 }

</bundles_post_ra>
